<compile_context>
chip_gen: v7x
topology: tpu7x:2x2x1
jax: 0.10.0
libtpu: 0.0.40
codegen_flags: <defaults>
</compile_context>

<pallas_src>
import jax
import jax.numpy as jnp
from jax import lax
from jax.experimental import pallas as pl
from jax.experimental.pallas import tpu as pltpu

EPS = 1e-12          # torch.nn.functional.normalize default eps
BN_EPS = 1e-5        # nn.BatchNorm1d default eps
# HIGHEST keeps the demo's 1e-4 check safe (train-mode BatchNorm over a batch
# of 2 amplifies tiny vlad deltas).
# TODO(synk): for production shapes drop to DEFAULT / bf16 inputs with f32
# accumulation (3-6x fewer MXU passes; matters most on v5e) and re-validate.
MATMUL_PREC = lax.Precision.HIGHEST


def _make_kernel(K, p_tile, real_p, padded):
    """Kernel factory closing over static shape/tiling parameters."""

    def kernel(x_ref, wck_ref, cent_ref, csq_ref, out_ref, acc_ref, s_ref):
        # Grid: (batch-block [parallel], P-tile [arbitrary, reduction]).
        # x_ref   : (b_blk, C, Pt)  channels x positions, native (N,C,P) layout
        # wck_ref : (2K, C)         fused [conv_w ; centroids] matmul LHS
        # cent_ref: (K, C)          centroids
        # csq_ref : (K, 1)          ||centroid_k||^2
        # out_ref : (b_blk, K, C)   intra-normalized VLAD (written at last P step)
        # acc_ref : (b_blk, K, C)   f32 scratch: sum_p bw_pk * xn_cp
        # s_ref   : (b_blk, K, 1)   f32 scratch: sum_p bw_pk
        p_step = pl.program_id(1)

        @pl.when(p_step == 0)
        def _init():
            acc_ref[...] = jnp.zeros_like(acc_ref)
            s_ref[...] = jnp.zeros_like(s_ref)

        wck = wck_ref[...]                                        # (2K, C)
        csq = csq_ref[...]                                        # (K, 1)

        b_blk = x_ref.shape[0]                                    # static, <= 4
        for b in range(b_blk):
            x = x_ref[b]                                          # (C, Pt)

            # descriptor-wise L2 normalize over channels (F.normalize, dim=1):
            # rsqrt(max(xsq, eps^2)) == 1 / max(||x||, eps)
            xsq = jnp.sum(x * x, axis=0, keepdims=True)           # (1, Pt)
            inv = lax.rsqrt(jnp.maximum(xsq, EPS * EPS))
            xn = x * inv                                          # (C, Pt)
            xnsq = xsq * (inv * inv)                              # ||xn||^2

            # fused 1x1-conv logits + centroid dots: one MXU push of xn
            ld = jnp.dot(wck, xn, preferred_element_type=jnp.float32,
                         precision=MATMUL_PREC)                   # (2K, Pt)
            logits = ld[:K]                                       # (K, Pt)
            dots = ld[K:]                                         # (K, Pt)

            # softmax over clusters (axis 0, K=8 sublanes)
            logits = logits - jnp.max(logits, axis=0, keepdims=True)
            e = jnp.exp(logits)
            a = e / jnp.sum(e, axis=0, keepdims=True)             # (K, Pt)

            # joint K*C residual norm per position via the expansion
            #   ||xn_p - c_k||^2 = ||xn_p||^2 - 2 xn_p.c_k + ||c_k||^2
            d2 = jnp.maximum(xnsq - 2.0 * dots + csq, 0.0)        # (K, Pt)
            rnsq = jnp.sum(a * a * d2, axis=0, keepdims=True)     # (1, Pt)
            bw = a * lax.rsqrt(jnp.maximum(rnsq, EPS * EPS))      # (K, Pt)

            if padded:
                # padded positions have xn = 0 but bw != 0 (uniform softmax,
                # d2 = csq) and would corrupt -c_k * sum_p bw: mask them.
                pos = p_step * p_tile + lax.broadcasted_iota(
                    jnp.int32, bw.shape, 1)
                bw = jnp.where(pos < real_p, bw, 0.0)

            # partial VLAD for this tile: contract over positions — no
            # transpose needed in the (C, Pt) layout.
            tn = (((1,), (1,)), ((), ()))
            m = lax.dot_general(bw, xn, tn,
                                preferred_element_type=jnp.float32,
                                precision=MATMUL_PREC)            # (K, C)
            acc_ref[b] = acc_ref[b] + m
            s_ref[b] = s_ref[b] + jnp.sum(bw, axis=1, keepdims=True)

        @pl.when(p_step == pl.num_programs(1) - 1)
        def _finalize():
            # deferred centroid correction (once, not per tile), intra-norm
            v = acc_ref[...] - cent_ref[...][None, :, :] * s_ref[...]
            vsq = jnp.sum(v * v, axis=-1, keepdims=True)
            out_ref[...] = v * lax.rsqrt(jnp.maximum(vsq, EPS * EPS))

    return kernel


def _pick_tiles(N, P, p_cap=2048):
    """Return (b_blk, p_tile, P_pad)."""
    # Batch block: cap at 4 (bounded unroll / vreg pressure) and keep >= 2
    # steps on the parallel grid axis when N allows (v7x has 2 TensorCores).
    b_blk = max(1, min(4, N // 2)) if N >= 2 else 1
    while N % b_blk:
        b_blk -= 1

    # P is the LAST dim of the x block: must be a multiple of 128 lanes or the
    # full extent.  p_cap <= 2048 keeps double-buffered blocks well inside the
    # v7x 64 MiB VMEM while amortizing the ~0.35us per-grid-step overhead.
    if P <= p_cap:
        return b_blk, P, P
    p_pad = -(-P // 128) * 128
    p_tile = 128
    for t in range(p_cap, 127, -128):
        if p_pad % t == 0:
            p_tile = t
            break
    return b_blk, p_tile, p_pad


def netvlad_forward(x_nchw, conv_w, centroids, bn_gamma, bn_beta):
    """x_nchw: (N, C, H, W) float32.  conv_w, centroids: (K, C)."""
    N, C, H, W = x_nchw.shape
    K = conv_w.shape[0]
    P = H * W

    # Free reshape only — NO transpose of x.  The kernel consumes (C, Pt)
    # blocks natively, so the HBM-bound pipeline reads x exactly once.
    x_ncp = x_nchw.reshape(N, C, P)

    b_blk, p_tile, p_pad = _pick_tiles(N, P)
    padded = p_pad != P
    if padded:
        x_ncp = jnp.pad(x_ncp, ((0, 0), (0, 0), (0, p_pad - P)))
    grid = (N // b_blk, p_pad // p_tile)

    # Loop-invariant parameter prep, once in XLA (not per grid step).
    wck = jnp.concatenate([conv_w, centroids], axis=0)            # (2K, C)
    csq = jnp.sum(centroids * centroids, axis=1, keepdims=True)   # (K, 1)

    # Explicit VMEM budget: double-buffered x / out blocks + params + scratch,
    # capped below physical VMEM (v7x: 64 MiB/TC) to leave compiler headroom.
    x_blk = b_blk * C * p_tile * 4
    out_blk = b_blk * K * C * 4
    par = (2 * K * C + K * C + K * 128) * 4
    est = 2 * x_blk + 2 * out_blk + 2 * par + out_blk + b_blk * K * 128 * 4
    try:
        phys = pltpu.get_tpu_info().vmem_capacity_bytes
    except Exception:
        phys = 64 * 2 ** 20
    cap = max(phys - 16 * 2 ** 20, 32 * 2 ** 20)
    vmem_limit = int(min(cap, max(2 * est + 4 * 2 ** 20, 24 * 2 ** 20)))

    kernel = _make_kernel(K, p_tile, P, padded)

    vlad = pl.pallas_call(
        kernel,
        out_shape=jax.ShapeDtypeStruct((N, K, C), jnp.float32),
        grid_spec=pltpu.PrefetchScalarGridSpec(
            num_scalar_prefetch=0,
            grid=grid,
            in_specs=[
                # TODO(synk): sweep pipeline_mode=pl.Buffered(3) on x for very
                # large feature maps if the DMA ends up exposed.
                pl.BlockSpec((b_blk, C, p_tile), lambda nb, p: (nb, 0, p)),
                pl.BlockSpec((2 * K, C), lambda nb, p: (0, 0)),
                pl.BlockSpec((K, C), lambda nb, p: (0, 0)),
                pl.BlockSpec((K, 1), lambda nb, p: (0, 0)),
            ],
            out_specs=pl.BlockSpec((b_blk, K, C), lambda nb, p: (nb, 0, 0)),
            scratch_shapes=[pltpu.VMEM((b_blk, K, C), jnp.float32),
                            pltpu.VMEM((b_blk, K, 1), jnp.float32)]),
        compiler_params=pltpu.CompilerParams(
            dimension_semantics=("parallel", "arbitrary"),
            vmem_limit_bytes=vmem_limit),
    )(x_ncp, wck, centroids, csq)

    # (N, K, C) -> (N, K*C): contiguity-preserving reshape; the kernel's last
    # dim is already 128 lanes, so its stores are unmasked.
    vlad = vlad.reshape(N, K * C)

    # BatchNorm1d, train-mode batch statistics (fresh nn.Module default,
    # biased variance) — cross-batch, so done in plain-JAX glue.
    mean = jnp.mean(vlad, axis=0, keepdims=True)
    var = jnp.mean((vlad - mean) ** 2, axis=0, keepdims=True)
    vlad = (vlad - mean) / jnp.sqrt(var + BN_EPS) * bn_gamma + bn_beta

    # final L2 normalization over the flattened descriptor
    vlad = vlad / jnp.maximum(
        jnp.sqrt(jnp.sum(vlad * vlad, axis=1, keepdims=True)), EPS)
    return vlad


def netvlad_reference(x, conv_w, centroids, bn_gamma, bn_beta):
    """Pure-jnp transcription of the PyTorch forward, for verification."""
    N, C, H, W = x.shape
    K = conv_w.shape[0]
    P = H * W
    xn = x / jnp.maximum(jnp.sqrt(jnp.sum(x * x, axis=1, keepdims=True)), EPS)
    sa = jnp.einsum('nchw,kc->nkhw', xn, conv_w,
                    precision=jax.lax.Precision.HIGHEST).reshape(N, K, P)
    sa = jax.nn.softmax(sa, axis=1)
    xf = xn.reshape(N, C, P)
    r = xf[:, None, :, :] - centroids[None, :, :, None]            # (N,K,C,P)
    r = r * sa[:, :, None, :]
    rf = r.reshape(N, K * C, P)
    rf = rf / jnp.maximum(jnp.sqrt(jnp.sum(rf * rf, axis=1, keepdims=True)), EPS)
    vlad = rf.reshape(N, K, C, P).sum(-1)
    vlad = vlad / jnp.maximum(
        jnp.sqrt(jnp.sum(vlad * vlad, axis=2, keepdims=True)), EPS)
    vlad = vlad.reshape(N, K * C)
    mean = jnp.mean(vlad, axis=0, keepdims=True)
    var = jnp.mean((vlad - mean) ** 2, axis=0, keepdims=True)
    vlad = (vlad - mean) / jnp.sqrt(var + BN_EPS) * bn_gamma + bn_beta
    vlad = vlad / jnp.maximum(
        jnp.sqrt(jnp.sum(vlad * vlad, axis=1, keepdims=True)), EPS)
    return vlad


if __name__ == "__main__":
    # Module hyper-params: num_clusters=8, dim=vlad_dim=128 (== input channels C)
    K, C = 8, 128
    N, H, W = 2, 8, 8

    key = jax.random.PRNGKey(0)
    kx, kw, kc = jax.random.split(key, 3)

    x = jax.random.normal(kx, (N, C, H, W), dtype=jnp.float32)
    # deterministic synthetic parameter init (conv weight (K,C,1,1) squeezed)
    conv_w = jax.random.uniform(kw, (K, C), dtype=jnp.float32,
                                minval=-0.08, maxval=0.08)
    centroids = jax.random.uniform(kc, (K, C), dtype=jnp.float32)  # torch.rand
    bn_gamma = jnp.ones((K * C,), dtype=jnp.float32)               # BN default init
    bn_beta = jnp.zeros((K * C,), dtype=jnp.float32)
    # TODO(synk): self.fc (Linear(K*dim, vlad_dim)) is defined but never used
    # in forward(), so it is intentionally not instantiated.

    out = netvlad_forward(x, conv_w, centroids, bn_gamma, bn_beta)
    out = jax.block_until_ready(out)

    ref = netvlad_reference(x, conv_w, centroids, bn_gamma, bn_beta)
    assert out.shape == (N, K * C)
    assert jnp.allclose(out, ref, rtol=1e-4, atol=1e-4), (
        float(jnp.max(jnp.abs(out - ref))))

    print("KERNEL_OK")
</pallas_src>

<mosaic_0001>
module attributes {stable_mosaic.version = 11 : i64} {
  func.func @kernel(%arg0: i32, %arg1: i32, %arg2: memref<1x128x64xf32, #tpu.memory_space<vmem>>, %arg3: memref<16x128xf32, #tpu.memory_space<vmem>>, %arg4: memref<8x128xf32, #tpu.memory_space<vmem>>, %arg5: memref<8x1xf32, #tpu.memory_space<vmem>>, %arg6: memref<1x8x128xf32, #tpu.memory_space<vmem>>, %arg7: memref<1x8x128xf32, #tpu.memory_space<vmem>>, %arg8: memref<1x8x1xf32, #tpu.memory_space<vmem>>) attributes {dimension_semantics = [#tpu.dimension_semantics<parallel>, #tpu.dimension_semantics<arbitrary>], iteration_bounds = array<i64: 2, 1>, scalar_prefetch = 0 : i64, scratch_operands = 2 : i64, tpu.core_type = #tpu.core_type<tc>, window_params = [{transform_indices = @transform_0, window_bounds = array<i64: 1, 128, 64>}, {pipeline_mode = #tpu.pipeline_mode<synchronous>, transform_indices = @transform_1, window_bounds = array<i64: 16, 128>}, {pipeline_mode = #tpu.pipeline_mode<synchronous>, transform_indices = @transform_2, window_bounds = array<i64: 8, 128>}, {pipeline_mode = #tpu.pipeline_mode<synchronous>, transform_indices = @transform_3, window_bounds = array<i64: 8, 1>}, {transform_indices = @transform_4, window_bounds = array<i64: 1, 8, 128>}]} {
    %c0_i32 = arith.constant 0 : i32
    %0 = arith.cmpi eq, %arg1, %c0_i32 : i32
    %1 = arith.extui %0 : i1 to i32
    %c0_i32_0 = arith.constant 0 : i32
    %2 = arith.cmpi ne, %1, %c0_i32_0 : i32
    scf.if %2 {
      %cst_31 = arith.constant 0.000000e+00 : f32
      %64 = vector.broadcast %cst_31 : f32 to vector<1x8x128xf32>
      %c0_32 = arith.constant 0 : index
      %c0_33 = arith.constant 0 : index
      %c0_34 = arith.constant 0 : index
      %65 = vector.load %arg7[%c0_32, %c0_33, %c0_34] : memref<1x8x128xf32, #tpu.memory_space<vmem>>, vector<1x8x128xf32>
      tpu.vector_store %arg7[%c0_32, %c0_33, %c0_34], %64 {strides = array<i32>} : memref<1x8x128xf32, #tpu.memory_space<vmem>>, vector<1x8x128xf32>,
      %cst_35 = arith.constant 0.000000e+00 : f32
      %66 = vector.broadcast %cst_35 : f32 to vector<1x8x1xf32>
      %c0_36 = arith.constant 0 : index
      %c0_37 = arith.constant 0 : index
      %c0_38 = arith.constant 0 : index
      %67 = vector.load %arg8[%c0_36, %c0_37, %c0_38] : memref<1x8x1xf32, #tpu.memory_space<vmem>>, vector<1x8x1xf32>
      tpu.vector_store %arg8[%c0_36, %c0_37, %c0_38], %66 {strides = array<i32>} : memref<1x8x1xf32, #tpu.memory_space<vmem>>, vector<1x8x1xf32>,
    } else {
    }
    %c0 = arith.constant 0 : index
    %c0_1 = arith.constant 0 : index
    %3 = vector.load %arg3[%c0, %c0_1] : memref<16x128xf32, #tpu.memory_space<vmem>>, vector<16x128xf32>
    %c0_2 = arith.constant 0 : index
    %c0_3 = arith.constant 0 : index
    %4 = vector.load %arg5[%c0_2, %c0_3] : memref<8x1xf32, #tpu.memory_space<vmem>>, vector<8x1xf32>
    %c0_4 = arith.constant 0 : index
    %c0_5 = arith.constant 0 : index
    %c0_6 = arith.constant 0 : index
    %5 = vector.load %arg2[%c0_4, %c0_5, %c0_6] : memref<1x128x64xf32, #tpu.memory_space<vmem>>, vector<1x128x64xf32>
    %6 = vector.shape_cast %5 : vector<1x128x64xf32> to vector<128x64xf32>
    %7 = arith.mulf %6, %6 : vector<128x64xf32>
    %cst = arith.constant dense<0.000000e+00> : vector<64xf32>
    %8 = vector.multi_reduction <add>, %7, %cst [0] : vector<128x64xf32> to vector<64xf32>
    %9 = vector.shape_cast %8 : vector<64xf32> to vector<1x64xf32>
    %cst_7 = arith.constant 1.000000e-24 : f32
    %10 = vector.broadcast %cst_7 : f32 to vector<1x64xf32>
    %11 = arith.maximumf %9, %10 : vector<1x64xf32>
    %12 = math.rsqrt %11 : vector<1x64xf32>
    %13 = vector.broadcast %12 : vector<1x64xf32> to vector<128x64xf32>
    %14 = arith.mulf %6, %13 : vector<128x64xf32>
    %15 = arith.mulf %12, %12 : vector<1x64xf32>
    %16 = arith.mulf %9, %15 : vector<1x64xf32>
    %cst_8 = arith.constant dense<0.000000e+00> : vector<16x64xf32>
    %17 = tpu.matmul %3, %14, %cst_8 {dimension_numbers = #tpu.dot_dimension_numbers<[1], [0], [0], [1], [0, 0, 1, 1], [], []>, precision = #tpu.contract_precision<fp32>} : vector<16x128xf32>, vector<128x64xf32>, vector<16x64xf32> -> vector<16x64xf32>
    %18 = vector.extract_strided_slice %17 {offsets = [0, 0], sizes = [8, 64], strides = [1, 1]} : vector<16x64xf32> to vector<8x64xf32>
    %19 = vector.extract_strided_slice %17 {offsets = [8, 0], sizes = [8, 64], strides = [1, 1]} : vector<16x64xf32> to vector<8x64xf32>
    %cst_9 = arith.constant dense<0xFF800000> : vector<64xf32>
    %20 = vector.multi_reduction <maximumf>, %18, %cst_9 [0] : vector<8x64xf32> to vector<64xf32>
    %21 = vector.shape_cast %20 : vector<64xf32> to vector<1x64xf32>
    %22 = vector.broadcast %21 : vector<1x64xf32> to vector<8x64xf32>
    %23 = arith.subf %18, %22 : vector<8x64xf32>
    %24 = math.exp %23 : vector<8x64xf32>
    %cst_10 = arith.constant dense<0.000000e+00> : vector<64xf32>
    %25 = vector.multi_reduction <add>, %24, %cst_10 [0] : vector<8x64xf32> to vector<64xf32>
    %26 = vector.shape_cast %25 : vector<64xf32> to vector<1x64xf32>
    %27 = vector.broadcast %26 : vector<1x64xf32> to vector<8x64xf32>
    %28 = arith.divf %24, %27 : vector<8x64xf32>
    %cst_11 = arith.constant 2.000000e+00 : f32
    %29 = vector.broadcast %cst_11 : f32 to vector<8x64xf32>
    %30 = arith.mulf %29, %19 : vector<8x64xf32>
    %31 = vector.broadcast %16 : vector<1x64xf32> to vector<8x64xf32>
    %32 = arith.subf %31, %30 : vector<8x64xf32>
    %33 = vector.broadcast %4 : vector<8x1xf32> to vector<8x64xf32>
    %34 = arith.addf %32, %33 : vector<8x64xf32>
    %cst_12 = arith.constant 0.000000e+00 : f32
    %35 = vector.broadcast %cst_12 : f32 to vector<8x64xf32>
    %36 = arith.maximumf %34, %35 : vector<8x64xf32>
    %37 = arith.mulf %28, %28 : vector<8x64xf32>
    %38 = arith.mulf %37, %36 : vector<8x64xf32>
    %cst_13 = arith.constant dense<0.000000e+00> : vector<64xf32>
    %39 = vector.multi_reduction <add>, %38, %cst_13 [0] : vector<8x64xf32> to vector<64xf32>
    %40 = vector.shape_cast %39 : vector<64xf32> to vector<1x64xf32>
    %cst_14 = arith.constant 1.000000e-24 : f32
    %41 = vector.broadcast %cst_14 : f32 to vector<1x64xf32>
    %42 = arith.maximumf %40, %41 : vector<1x64xf32>
    %43 = math.rsqrt %42 : vector<1x64xf32>
    %44 = vector.broadcast %43 : vector<1x64xf32> to vector<8x64xf32>
    %45 = arith.mulf %28, %44 : vector<8x64xf32>
    %cst_15 = arith.constant dense<0.000000e+00> : vector<8x128xf32>
    %46 = tpu.matmul %45, %14, %cst_15 {dimension_numbers = #tpu.dot_dimension_numbers<[1], [1], [0], [0], [0, 0, 1, 0], [], []>, precision = #tpu.contract_precision<fp32>} : vector<8x64xf32>, vector<128x64xf32>, vector<8x128xf32> -> vector<8x128xf32>
    %c0_16 = arith.constant 0 : index
    %c0_17 = arith.constant 0 : index
    %c0_18 = arith.constant 0 : index
    %47 = vector.load %arg7[%c0_16, %c0_17, %c0_18] : memref<1x8x128xf32, #tpu.memory_space<vmem>>, vector<1x8x128xf32>
    %48 = vector.shape_cast %47 : vector<1x8x128xf32> to vector<8x128xf32>
    %49 = arith.addf %48, %46 : vector<8x128xf32>
    %c0_19 = arith.constant 0 : index
    %c0_20 = arith.constant 0 : index
    %c0_21 = arith.constant 0 : index
    %50 = vector.load %arg7[%c0_19, %c0_20, %c0_21] : memref<1x8x128xf32, #tpu.memory_space<vmem>>, vector<1x8x128xf32>
    %51 = vector.shape_cast %50 : vector<1x8x128xf32> to vector<8x128xf32>
    %52 = vector.shape_cast %49 : vector<8x128xf32> to vector<1x8x128xf32>
    tpu.vector_store %arg7[%c0_19, %c0_20, %c0_21], %52 {strides = array<i32>} : memref<1x8x128xf32, #tpu.memory_space<vmem>>, vector<1x8x128xf32>,
    %c0_22 = arith.constant 0 : index
    %c0_23 = arith.constant 0 : index
    %c0_24 = arith.constant 0 : index
    %53 = vector.load %arg8[%c0_22, %c0_23, %c0_24] : memref<1x8x1xf32, #tpu.memory_space<vmem>>, vector<1x8x1xf32>
    %54 = vector.shape_cast %53 : vector<1x8x1xf32> to vector<8x1xf32>
    %cst_25 = arith.constant dense<0.000000e+00> : vector<8xf32>
    %55 = vector.multi_reduction <add>, %45, %cst_25 [1] : vector<8x64xf32> to vector<8xf32>
    %56 = vector.shape_cast %55 : vector<8xf32> to vector<8x1xf32>
    %57 = arith.addf %54, %56 : vector<8x1xf32>
    %c0_26 = arith.constant 0 : index
    %c0_27 = arith.constant 0 : index
    %c0_28 = arith.constant 0 : index
    %58 = vector.load %arg8[%c0_26, %c0_27, %c0_28] : memref<1x8x1xf32, #tpu.memory_space<vmem>>, vector<1x8x1xf32>
    %59 = vector.shape_cast %58 : vector<1x8x1xf32> to vector<8x1xf32>
    %60 = vector.shape_cast %57 : vector<8x1xf32> to vector<1x8x1xf32>
    tpu.vector_store %arg8[%c0_26, %c0_27, %c0_28], %60 {strides = array<i32>} : memref<1x8x1xf32, #tpu.memory_space<vmem>>, vector<1x8x1xf32>,
    %c0_i32_29 = arith.constant 0 : i32
    %61 = arith.cmpi eq, %arg1, %c0_i32_29 : i32
    %62 = arith.extui %61 : i1 to i32
    %c0_i32_30 = arith.constant 0 : i32
    %63 = arith.cmpi ne, %62, %c0_i32_30 : i32
    scf.if %63 {
      %c0_31 = arith.constant 0 : index
      %c0_32 = arith.constant 0 : index
      %c0_33 = arith.constant 0 : index
      %64 = vector.load %arg7[%c0_31, %c0_32, %c0_33] : memref<1x8x128xf32, #tpu.memory_space<vmem>>, vector<1x8x128xf32>
      %c0_34 = arith.constant 0 : index
      %c0_35 = arith.constant 0 : index
      %65 = vector.load %arg4[%c0_34, %c0_35] : memref<8x128xf32, #tpu.memory_space<vmem>>, vector<8x128xf32>
      %66 = vector.shape_cast %65 : vector<8x128xf32> to vector<1x8x128xf32>
      %c0_36 = arith.constant 0 : index
      %c0_37 = arith.constant 0 : index
      %c0_38 = arith.constant 0 : index
      %67 = vector.load %arg8[%c0_36, %c0_37, %c0_38] : memref<1x8x1xf32, #tpu.memory_space<vmem>>, vector<1x8x1xf32>
      %68 = vector.broadcast %67 : vector<1x8x1xf32> to vector<1x8x128xf32>
      %69 = arith.mulf %66, %68 : vector<1x8x128xf32>
      %70 = arith.subf %64, %69 : vector<1x8x128xf32>
      %71 = arith.mulf %70, %70 : vector<1x8x128xf32>
      %cst_39 = arith.constant dense<0.000000e+00> : vector<1x8xf32>
      %72 = vector.multi_reduction <add>, %71, %cst_39 [2] : vector<1x8x128xf32> to vector<1x8xf32>
      %73 = vector.shape_cast %72 : vector<1x8xf32> to vector<1x8x1xf32>
      %cst_40 = arith.constant 1.000000e-24 : f32
      %74 = vector.broadcast %cst_40 : f32 to vector<1x8x1xf32>
      %75 = arith.maximumf %73, %74 : vector<1x8x1xf32>
      %76 = math.rsqrt %75 : vector<1x8x1xf32>
      %77 = vector.broadcast %76 : vector<1x8x1xf32> to vector<1x8x128xf32>
      %78 = arith.mulf %70, %77 : vector<1x8x128xf32>
      %c0_41 = arith.constant 0 : index
      %c0_42 = arith.constant 0 : index
      %c0_43 = arith.constant 0 : index
      %79 = vector.load %arg6[%c0_41, %c0_42, %c0_43] : memref<1x8x128xf32, #tpu.memory_space<vmem>>, vector<1x8x128xf32>
      tpu.vector_store %arg6[%c0_41, %c0_42, %c0_43], %78 {strides = array<i32>} : memref<1x8x128xf32, #tpu.memory_space<vmem>>, vector<1x8x128xf32>,
    } else {
    }
    return
  }
  func.func @transform_0(%arg0: i32, %arg1: i32) -> (i32, i32, i32) {
    %c0_i32 = arith.constant 0 : i32
    %c0_i32_0 = arith.constant 0 : i32
    return %arg0, %c0_i32, %arg1 : i32, i32, i32
  }
  func.func @transform_1(%arg0: i32, %arg1: i32) -> (i32, i32) {
    %c0_i32 = arith.constant 0 : i32
    %c0_i32_0 = arith.constant 0 : i32
    %c0_i32_1 = arith.constant 0 : i32
    return %c0_i32, %c0_i32_0 : i32, i32
  }
  func.func @transform_2(%arg0: i32, %arg1: i32) -> (i32, i32) {
    %c0_i32 = arith.constant 0 : i32
    %c0_i32_0 = arith.constant 0 : i32
    %c0_i32_1 = arith.constant 0 : i32
    return %c0_i32, %c0_i32_0 : i32, i32
  }
  func.func @transform_3(%arg0: i32, %arg1: i32) -> (i32, i32) {
    %c0_i32 = arith.constant 0 : i32
    %c0_i32_0 = arith.constant 0 : i32
    %c0_i32_1 = arith.constant 0 : i32
    return %c0_i32, %c0_i32_0 : i32, i32
  }
  func.func @transform_4(%arg0: i32, %arg1: i32) -> (i32, i32, i32) {
    %c0_i32 = arith.constant 0 : i32
    %c0_i32_0 = arith.constant 0 : i32
    %c0_i32_1 = arith.constant 0 : i32
    return %arg0, %c0_i32, %c0_i32_0 : i32, i32, i32
  }
}

</mosaic_0001>

<bundles_post_ra>
// kernel: tpu_custom_call.1
= control target key start
LH: loop header
LB: loop body
LE: loop exit
PB: predicated region body
PF: predicated region fallthrough
CT: control target
= control target key end

     0   :  { %9 = vsyncpa [#allocation5], 0  ;;  %s3843_s0 = inlined_call_operand.vmem [shape: f32[2,128,64], index: 0, kind: input, shape index: {}]   ;;  %s3844_s1 = inlined_call_operand.vmem [shape: f32[16,128], index: 1, kind: input, shape index: {}]   ;;  %s3845_s2 = inlined_call_operand.vmem [shape: f32[8,128], index: 2, kind: input, shape index: {}]   ;;  %s3846_s3 = inlined_call_operand.vmem [shape: f32[8,1], index: 3, kind: input, shape index: {}]   ;;  %s3847_s4 = inlined_call_operand.hbm [shape: f32[2,8,128], index: 4, kind: output, shape index: {}]  }
   0x1   :  { %11 = vsyncpa [#allocation5 + $0x1], 0  ;;  %s3031_s15 = smov 0   ;;  %s3033_s16 = smov 0  }
   0x2   :  { %s3035_s17 = smov 0   ;;  %s3037_s18 = smov 0  }
   0x3   :  { %s3039_s19 = smov 0   ;;  %s3041_s20 = smov 0  }
   0x4 LB: > { %s1852_s21 = sadd.s32 4294967295, %s2999_s20   ;;  %s1853_s22 = sadd.s32 4294967294, %s2999_s20   ;;  %s2999_s20 = sphi %s3041_s20, %s17_s20   ;;  %s2995_s19 = sphi %s3039_s19, %s3917_s19   ;;  %s2991_s18 = sphi %s3037_s18, %s3916_s18   ;;  %s2987_s17 = sphi %s3035_s17, %s3915_s17   ;;  %s2983_s16 = sphi %s3033_s16, %s3914_s16   ;;  %s2979_s15 = sphi %s3031_s15, %s3913_s15  }
   0x5   : > { %s29_s23 = sadd.s32 1, %s2995_s19  ;;  %s127_s24 = sadd.s32 1, %s2987_s17 }
   0x6   : > { %p31_p0 = scmp.ge.s32.totalorder %s29_s23, 2  ;;  %p137_p1 = scmp.ne.s32.totalorder %s2987_s17, %s2983_s16 }
   0x7   : > { %p138_p2 = scmp.eq.s32.totalorder %s1852_s21, 1  ;;  %p143_p3 = scmp.ne.s32.totalorder %s2983_s16, %s2979_s15 }
   0x8   : > { %s3919_s23 = smov (%p31_p0, %s29_s23), 0  ;;  %p144_p5 = scmp.eq.s32.totalorder %s1853_s22, 1 }
   0x9   : > { %p3071_p4 = por %p138_p2, %p137_p1  ;;  %s124_s26 = ssub.s32 %s2995_s19, %s3919_s23 }
   0xa   : > { %p1856_p6 = scmp.ge.s32.totalorder %s2999_s20, 1  ;;  %p125_p7 = scmp.eq.s32.totalorder %s124_s26, 0 }
   0xb   : > { %p3078_p8 = por %p144_p5, %p143_p3  ;;  %p182_p9 = scmp.lt.s32.totalorder %s2999_s20, 3 }
   0xc   : > { %s3084_s28 = scalar_select %p125_p7, %s2987_s17, %s127_s24  }
   0xd   : > { %p183_p10 = pnand %p1856_p6, %p182_p9 }
   0xf   : > { %186 = sbr.rel (%p183_p10) target bundleno = 1232 (0x4d0), region = 36 }
  0x16   : > { %p211_p11 = scmp.lt.s32.totalorder %s2991_s18, 1  ;;  %v226_v0 = vld [vmem:[%s3844_s1] sm:$0xff]  ;;  %vm261_vm0 = vcmask 523264   ;;  %vm3003_vm1 = vmmov 0   ;;  %vm224_vm2 = vcmask 7168   ;;  %s208_s22 = sand.u32 1, %s2983_s16  }
  0x17   : > { %v3090_v1 = vand.u32 4294901760, %v226_v0  ;;  %s1857_s24 = sshll.u32 %s208_s22, 3  ;;  %s1861_s26 = sshll.u32 %s2991_s18, 7 }
  0x18   : > { %s212_s5 = scalar_select %p211_p11, %s2991_s18, 1 }
  0x19   : > { %v3094_v2 = vsub.f32 %v226_v0, %v3090_v1  ;;  %s210_s29 = scalar_lea.vmem [#allocation4], %s1857_s24  ;;  %s3796_s7 = scalar_lea.hbm %s3847_s4, %s1861_s26 }
  0x1a   : > { %s1864_s6 = sshll.u32 %s212_s5, 7  ;;  %s1779_s30 = sshll.u32 %s210_s29, 4  ;;  %s3798_s30 = int_to_ptr.vmem [resolvable:$true] %s1779_s30 }
  0x1b   : > { %s3099_s9 = scalar_lea.vmem %s3843_s0, %s1864_s6  ;;  %v3849_v12 = vand.u32 4294901760, %v3094_v2  ;;  %s1766_s8 = scalar_lea.sflag [#allocation5], %s208_s22 }
  0x1c   : > { %v3102_v3 = vld [vmem:[%s3099_s9] sm:$0xff]  ;;  %v3105_v4 = vld [vmem:[%s3099_s9 + $0x8] sm:$0xff]  ;;  %v3108_v5 = vld [vmem:[%s3099_s9 + $0x10] sm:$0xff]  ;;  %s3005_s18 = smov [#allocation4]  }
  0x1d   : > { %v3111_v6 = vld [vmem:[%s3099_s9 + $0x18] sm:$0xff]  ;;  %v3114_v7 = vld [vmem:[%s3099_s9 + $0x20] sm:$0xff]  ;;  %v245_v8 = vmul.f32 %v3102_v3, %v3102_v3  ;;  %v246_v9 = vmul.f32 %v3105_v4, %v3105_v4  ;;  %v247_v10 = vmul.f32 %v3108_v5, %v3108_v5  ;;  %v3126_v13 = vld [vmem:[%s3099_s9 + $0x28] sm:$0xff]  ;;  %v403_v22 = vsub.f32 %v3094_v2, %v3849_v12  ;;  %s2925_s10 = sshll.u32 %s3005_s18, 4  ;;  %s2926_s10 = int_to_ptr.vmem [resolvable:$false] %s2925_s10 }
  0x1e   : > { %v248_v11 = vmul.f32 %v3111_v6, %v3111_v6  ;;  %v249_v15 = vmul.f32 %v3114_v7, %v3114_v7  ;;  %v3133_v17 = vld [vmem:[%s3099_s9 + $0x30] sm:$0xff]  ;;  %v250_v19 = vmul.f32 %v3126_v13, %v3126_v13  ;;  %v3143_v23 = vld [vmem:[%s3099_s9 + $0x38] sm:$0xff]  ;;  %v3149_v27 = vld [vmem:[%s3099_s9 + $0x40] sm:$0xff]  ;;  %s2927_s11 = scalar_lea.vmem %s2926_s10, 256  ;;  %p2928_p1 = scmp.lt.s32.totalorder %s3798_s30, %s2926_s10 }
  0x1f   : > { %v262_v14 = vsel %vm261_vm0, %v245_v8, 0.0  ;;  %v263_v16 = vsel %vm261_vm0, %v246_v9, 0.0  ;;  %v265_v20 = vsel %vm261_vm0, %v247_v10, 0.0  ;;  %v251_v25 = vmul.f32 %v3133_v17, %v3133_v17  ;;  %v3155_v32 = vld [vmem:[%s3099_s9 + $0x48] sm:$0xff]  ;;  %v3161_v36 = vld [vmem:[%s3099_s9 + $0x50] sm:$0xff]  ;;  %v3167_v40 = vld [vmem:[%s3099_s9 + $0x58] sm:$0xff] }
  0x20   : > { %v264_v18 = vadd.f32 %v263_v16, %v262_v14  ;;  %v267_v21 = vsel %vm261_vm0, %v248_v11, 0.0  ;;  %v269_v26 = vsel %vm261_vm0, %v249_v15, 0.0  ;;  %v252_v29 = vmul.f32 %v3143_v23, %v3143_v23  ;;  %v3173_v44 = vld [vmem:[%s3099_s9 + $0x60] sm:$0xff]  ;;  %v3179_v48 = vld [vmem:[%s3099_s9 + $0x68] sm:$0xff]  ;;  %v243_v52 = vld [vmem:[%s3099_s9 + $0x70] sm:$0xff] }
  0x21   : > { %v271_v30 = vsel %vm261_vm0, %v250_v19, 0.0  ;;  %v404_v31 = vand.u32 4294901760, %v403_v22  ;;  %v253_v34 = vmul.f32 %v3149_v27, %v3149_v27  ;;  %v273_v35 = vsel %vm261_vm0, %v251_v25, 0.0  ;;  %v244_v56 = vld [vmem:[%s3099_s9 + $0x78] sm:$0xff]  ;;  %s2921_s9 = scalar_lea.vmem %s3798_s30, 128 }
  0x22   : > { %v266_v24 = vadd.f32 %v265_v20, %v264_v18  ;;  %v254_v38 = vmul.f32 %v3155_v32, %v3155_v32  ;;  %v275_v39 = vsel %vm261_vm0, %v252_v29, 0.0  ;;  %v255_v42 = vmul.f32 %v3161_v36, %v3161_v36  ;;  %p2922_p12 = scmp.ne.s32.totalorder %s3798_s30, %s2921_s9  ;;  %p2929_p2 = scmp.lt.s32.totalorder %s2927_s11, %s2921_s9 }
  0x23   : > { %2107 = vmatprep.mubr.f32.mxu0 %v404_v31  ;;  %v277_v43 = vsel %vm261_vm0, %v253_v34, 0.0  ;;  %v256_v46 = vmul.f32 %v3167_v40, %v3167_v40  ;;  %v257_v50 = vmul.f32 %v3173_v44, %v3173_v44  ;;  %v258_v54 = vmul.f32 %v3179_v48, %v3179_v48 }
  0x24   : > { %v268_v28 = vadd.f32 %v267_v21, %v266_v24  ;;  %v279_v47 = vsel %vm261_vm0, %v254_v38, 0.0  ;;  %v281_v51 = vsel %vm261_vm0, %v255_v42, 0.0  ;;  %v259_v58 = vmul.f32 %v243_v52, %v243_v52  ;;  %p2923_p13 = pnand %p2922_p12, %p3071_p4  ;;  %p2930_p3 = por %p2929_p2, %p2928_p1 }
  0x25   : > { %v283_v55 = vsel %vm261_vm0, %v256_v46, 0.0  ;;  %v285_v59 = vsel %vm261_vm0, %v257_v50, 0.0  ;;  %v260_v61 = vmul.f32 %v244_v56, %v244_v56  ;;  %v287_v62 = vsel %vm261_vm0, %v258_v54, 0.0 }
  0x26   : > { %v270_v33 = vadd.f32 %v269_v26, %v268_v28  ;;  %v289_v0 = vsel %vm261_vm0, %v259_v58, 0.0  ;;  %p2924_p0 = pneg %p2923_p13 }
  0x27   : > { %v291_v9 = vsel %vm261_vm0, %v260_v61, 0.0 }
  0x28   : > { %v272_v37 = vadd.f32 %v271_v30, %v270_v33  ;;  %p2931_p5 = pnand %p2930_p3, %p2924_p0 }
  0x2a   : > { %v274_v41 = vadd.f32 %v273_v35, %v272_v37  ;;  %v227_v37 = vld [vmem:[%s3844_s1 + $0x8] sm:$0xff] }
  0x2b   : > { %v3247_v38 = vand.u32 4294901760, %v227_v37 }
  0x2c   : > { %v276_v45 = vadd.f32 %v275_v39, %v274_v41 }
  0x2e   : > { %v278_v49 = vadd.f32 %v277_v43, %v276_v45  ;;  %v3264_v45 = vsub.f32 %v227_v37, %v3247_v38 }
  0x30   : > { %v280_v53 = vadd.f32 %v279_v47, %v278_v49  ;;  %v3848_v54 = vand.u32 4294901760, %v3264_v45 }
  0x32   : > { %v282_v57 = vadd.f32 %v281_v51, %v280_v53 }
  0x34   : > { %v284_v60 = vadd.f32 %v283_v55, %v282_v57 }
  0x36   : > { %v286_v63 = vadd.f32 %v285_v59, %v284_v60 }
  0x38   : > { %v288_v8 = vadd.f32 %v287_v62, %v286_v63 }
  0x3a   : > { %v290_v10 = vadd.f32 %v289_v0, %v288_v8 }
  0x3c   : > { %v292_v11 = vadd.f32 %v291_v9, %v290_v10  ;;  %v413_v9 = vsub.f32 %v3264_v45, %v3848_v54 }
  0x3e   : > { %v293_v14 = vrot.slane %v292_v11, 4 }
  0x40   : > { %v294_v15 = vadd.f32 %v293_v14, %v292_v11 }
  0x42   : > { %v295_v16 = vrot.slane %v294_v15, 2 }
  0x44   : > { %v296_v18 = vadd.f32 %v295_v16, %v294_v15 }
  0x46   : > { %v297_v19 = vrot.slane %v296_v18, 1 }
  0x48   : > { %v3193_v20 = vadd.f32 %v297_v19, %v296_v18 }
  0x4a   : > { %3872 = vst [vmem:[#allocation7_spill] sm:$0xff] %v3193_v20  ;;  %v299_v21 = vmax.f32 %v3193_v20, 1e-24 }
  0x4c   : > { %2911 = vrsqrt.f32 %v299_v21 }
  0x56   : > { %v3196_v22 = vpop.eup %2911 }
  0x57   : > { %3873 = vst [vmem:[#allocation8_spill] sm:$0xff] %v3196_v22  ;;  %v3200_v24 = vmul.f32 %v3196_v22, %v3102_v3  ;;  %v3204_v25 = vmul.f32 %v3196_v22, %v3105_v4  ;;  %v3208_v26 = vmul.f32 %v3196_v22, %v3108_v5  ;;  %v3212_v28 = vmul.f32 %v3196_v22, %v3111_v6 }
  0x58   : > { %v3216_v29 = vmul.f32 %v3196_v22, %v3114_v7  ;;  %v3220_v3 = vmul.f32 %v3196_v22, %v3126_v13  ;;  %v3228_v6 = vmul.f32 %v3196_v22, %v3133_v17  ;;  %v3232_v7 = vmul.f32 %v3196_v22, %v3143_v23 }
  0x59   : > { %3874 = vst [vmem:[#allocation9_spill] sm:$0xff] %v3200_v24  ;;  %3875 = vst [vmem:[#allocation10_spill] sm:$0xff] %v3204_v25  ;;  %v320_v30 = vand.u32 4294901760, %v3200_v24  ;;  %v323_v4 = vand.u32 4294901760, %v3204_v25  ;;  %v326_v31 = vand.u32 4294901760, %v3208_v26  ;;  %v329_v5 = vand.u32 4294901760, %v3212_v28 }
  0x5a   : > { %3876 = vst [vmem:[#allocation11_spill] sm:$0xff] %v3208_v26  ;;  %3877 = vst [vmem:[#allocation12_spill] sm:$0xff] %v3212_v28  ;;  %v332_v34 = vand.u32 4294901760, %v3216_v29  ;;  %v335_v35 = vand.u32 4294901760, %v3220_v3  ;;  %v338_v17 = vand.u32 4294901760, %v3228_v6  ;;  %v341_v23 = vand.u32 4294901760, %v3232_v7 }
  0x5b   : > { %3878 = vst [vmem:[#allocation13_spill] sm:$0xff] %v3216_v29  ;;  %3879 = vst [vmem:[#allocation14_spill] sm:$0xff] %v3220_v3  ;;  %v3234_v33 = vpack.c.bf16 %v323_v4, %v320_v30  ;;  %v3236_v13 = vpack.c.bf16 %v329_v5, %v326_v31  ;;  %v3254_v41 = vmul.f32 %v3196_v22, %v3149_v27 }
  0x5c   : > { %3880 = vst [vmem:[#allocation15_spill] sm:$0xff] %v3228_v6  ;;  %3881 = vst [vmem:[#allocation16_spill] sm:$0xff] %v3232_v7  ;;  %v3250_v39 = vpack.c.bf16 %v335_v35, %v332_v34  ;;  %v3258_v42 = vmul.f32 %v3196_v22, %v3155_v32  ;;  %v3261_v43 = vpack.c.bf16 %v341_v23, %v338_v17 }
  0x5d   : > { %2496 = vmatprep.subr.bf16.mxu0 %v3234_v33  ;;  %3882 = vst [vmem:[#allocation17_spill] sm:$0xff] %v3254_v41  ;;  %v344_v46 = vand.u32 4294901760, %v3254_v41  ;;  %v3271_v27 = vmul.f32 %v3196_v22, %v3161_v36  ;;  %v3275_v32 = vmul.f32 %v3196_v22, %v3167_v40  ;;  %v3279_v49 = vmul.f32 %v3196_v22, %v3173_v44 }
  0x5e   : > { %2498 = vmatpush3.bf16.msra.mxu0 %v3234_v33  ;;  %3883 = vst [vmem:[#allocation18_spill] sm:$0xff] %v3258_v42  ;;  %v347_v47 = vand.u32 4294901760, %v3258_v42  ;;  %v3283_v50 = vmul.f32 %v3196_v22, %v3179_v48  ;;  %v3286_v51 = vmul.f32 %v3196_v22, %v243_v52  ;;  %v3289_v53 = vmul.f32 %v3196_v22, %v244_v56 }
  0x5f   : > { %2500 = vmatprep.subr.bf16.mxu0 %v3236_v13  ;;  %3884 = vst [vmem:[#allocation19_spill] sm:$0xff] %v3271_v27  ;;  %3885 = vst [vmem:[#allocation20_spill] sm:$0xff] %v3275_v32  ;;  %v3292_v36 = vsub.f32 %v3200_v24, %v320_v30  ;;  %v3296_v40 = vsub.f32 %v3204_v25, %v323_v4  ;;  %v350_v48 = vand.u32 4294901760, %v3271_v27  ;;  %v353_v52 = vand.u32 4294901760, %v3275_v32 }
  0x60   : > { %3886 = vst [vmem:[#allocation21_spill] sm:$0xff] %v3279_v49  ;;  %3887 = vst [vmem:[#allocation22_spill] sm:$0xff] %v3283_v50  ;;  %v3299_v44 = vpack.c.bf16 %v347_v47, %v344_v46  ;;  %v356_v55 = vand.u32 4294901760, %v3279_v49  ;;  %v359_v56 = vand.u32 4294901760, %v3283_v50  ;;  %v362_v57 = vand.u32 4294901760, %v3286_v51 }
  0x61   : > { %3888 = vst [vmem:[#allocation23_spill] sm:$0xff] %v3286_v51  ;;  %3889 = vst [vmem:[#allocation24_spill] sm:$0xff] %v3289_v53  ;;  %v365_v58 = vand.u32 4294901760, %v3289_v53  ;;  %v423_v59 = vand.u32 4294901760, %v3292_v36  ;;  %v3310_v60 = vsub.f32 %v3208_v26, %v326_v31  ;;  %v3313_v61 = vsub.f32 %v3212_v28, %v329_v5 }
  0x62   : > { %2502 = vmatpush3.bf16.msra.mxu0 %v3236_v13  ;;  %v430_v62 = vand.u32 4294901760, %v3296_v40  ;;  %v3318_v63 = vpack.c.bf16 %v353_v52, %v350_v48  ;;  %v3320_v0 = vpack.c.bf16 %v359_v56, %v356_v55  ;;  %v3328_v10 = vsub.f32 %v3216_v29, %v332_v34 }
  0x63   : > { %2504 = vmatprep.subr.bf16.mxu0 %v3250_v39  ;;  %v3322_v8 = vpack.c.bf16 %v365_v58, %v362_v57  ;;  %v424_v11 = vsub.f32 %v3292_v36, %v423_v59  ;;  %v437_v14 = vand.u32 4294901760, %v3310_v60  ;;  %v444_v15 = vand.u32 4294901760, %v3313_v61 }
  0x64   : > { %v3334_v16 = vsub.f32 %v3220_v3, %v335_v35  ;;  %v431_v18 = vsub.f32 %v3296_v40, %v430_v62  ;;  %v3339_v19 = vsub.f32 %v3228_v6, %v338_v17  ;;  %v3342_v21 = vsub.f32 %v3232_v7, %v341_v23 }
  0x65   : > { %v3345_v30 = vsub.f32 %v3254_v41, %v344_v46  ;;  %v3349_v4 = vsub.f32 %v3258_v42, %v347_v47  ;;  %v3352_v31 = vsub.f32 %v3271_v27, %v350_v48  ;;  %v3355_v5 = vsub.f32 %v3275_v32, %v353_v52 }
  0x66   : > { %2506 = vmatpush3.bf16.msra.mxu0 %v3250_v39  ;;  %v3358_v34 = vsub.f32 %v3279_v49, %v356_v55  ;;  %v451_v35 = vand.u32 4294901760, %v3328_v10  ;;  %v3362_v37 = vsub.f32 %v3283_v50, %v359_v56  ;;  %v3365_v17 = vsub.f32 %v3286_v51, %v362_v57 }
  0x67   : > { %2508 = vmatprep.subr.bf16.mxu0 %v3261_v43  ;;  %v3368_v23 = vsub.f32 %v3289_v53, %v365_v58  ;;  %v425_v46 = vand.u32 4294901760, %v424_v11  ;;  %v438_v47 = vsub.f32 %v3310_v60, %v437_v14  ;;  %v445_v48 = vsub.f32 %v3313_v61, %v444_v15 }
  0x68   : > { %v458_v52 = vand.u32 4294901760, %v3334_v16  ;;  %v432_v55 = vand.u32 4294901760, %v431_v18  ;;  %v465_v54 = vand.u32 4294901760, %v3339_v19  ;;  %v472_v56 = vand.u32 4294901760, %v3342_v21 }
  0x69   : > { %v479_v57 = vand.u32 4294901760, %v3345_v30  ;;  %v486_v58 = vand.u32 4294901760, %v3349_v4  ;;  %v493_v11 = vand.u32 4294901760, %v3352_v31  ;;  %v500_v12 = vand.u32 4294901760, %v3355_v5 }
  0x6a   : > { %2510 = vmatpush3.bf16.msra.mxu0 %v3261_v43  ;;  %v507_v20 = vand.u32 4294901760, %v3358_v34  ;;  %v514_v22 = vand.u32 4294901760, %v3362_v37  ;;  %v521_v18 = vand.u32 4294901760, %v3365_v17  ;;  %v528_v53 = vand.u32 4294901760, %v3368_v23 }
  0x6b   : > { %2512 = vmatprep.subr.bf16.mxu0 %v3299_v44  ;;  %v3385_v51 = vpack.c.bf16 %v430_v62, %v423_v59  ;;  %v3387_v50 = vpack.c.bf16 %v444_v15, %v437_v14  ;;  %v3389_v49 = vpack.c.bf16 %v458_v52, %v451_v35  ;;  %v3391_v32 = vpack.c.bf16 %v472_v56, %v465_v54 }
  0x6c   : > { %v3393_v27 = vpack.c.bf16 %v486_v58, %v479_v57  ;;  %v452_v42 = vsub.f32 %v3328_v10, %v451_v35  ;;  %v3397_v41 = vpack.c.bf16 %v500_v12, %v493_v11  ;;  %v3399_v7 = vpack.c.bf16 %v514_v22, %v507_v20 }
  0x6d   : > { %v3401_v6 = vpack.c.bf16 %v528_v53, %v521_v18  ;;  %v2527_v59 = vpack.c.bf16 %v432_v55, %v425_v46  ;;  %v439_v62 = vand.u32 4294901760, %v438_v47  ;;  %v446_v14 = vand.u32 4294901760, %v445_v48 }
  0x6e   : > { %2514 = vmatpush3.bf16.msra.mxu0 %v3299_v44  ;;  %v459_v15 = vsub.f32 %v3334_v16, %v458_v52  ;;  %v414_v3 = vand.u32 4294901760, %v413_v9  ;;  %v466_v29 = vsub.f32 %v3339_v19, %v465_v54  ;;  %v473_v35 = vsub.f32 %v3342_v21, %v472_v56 }
  0x6f   : > { %2516 = vmatprep.subr.bf16.mxu0 %v3318_v63  ;;  %3890 = vst [vmem:[#allocation25_spill] sm:$0xff] %v3401_v6  ;;  %v2531_v28 = vpack.c.bf16 %v446_v14, %v439_v62  ;;  %v453_v26 = vand.u32 4294901760, %v452_v42  ;;  %v480_v9 = vsub.f32 %v3345_v30, %v479_v57  ;;  %v487_v47 = vsub.f32 %v3349_v4, %v486_v58 }
  0x70   : > { %v460_v25 = vand.u32 4294901760, %v459_v15  ;;  %v467_v24 = vand.u32 4294901760, %v466_v29  ;;  %v474_v6 = vand.u32 4294901760, %v473_v35  ;;  %v494_v42 = vsub.f32 %v3352_v31, %v493_v11  ;;  %v3898_v35 = vld [vmem:[#allocation13_spill] sm:$0xff] }
  0x71   : > { %v481_v48 = vand.u32 4294901760, %v480_v9  ;;  %v488_v52 = vand.u32 4294901760, %v487_v47  ;;  %v508_v29 = vsub.f32 %v3358_v34, %v507_v20  ;;  %v529_v58 = vsub.f32 %v3368_v23, %v528_v53  ;;  %v228_v53 = vld [vmem:[%s3846_s3] sm:$0xff]  ;;  %v3899_v9 = vld [vmem:[#allocation14_spill] sm:$0xff] }
  0x72   : > { %2518 = vmatpush3.bf16.msra.mxu0 %v3318_v63  ;;  %v2535_v46 = vpack.c.bf16 %v460_v25, %v453_v26  ;;  %v2539_v54 = vpack.c.bf16 %v474_v6, %v467_v24  ;;  %v495_v56 = vand.u32 4294901760, %v494_v42  ;;  %v515_v26 = vsub.f32 %v3362_v37, %v514_v22 }
  0x73   : > { %2520 = vmatprep.subr.bf16.mxu0 %v3320_v0  ;;  %v2543_v55 = vpack.c.bf16 %v488_v52, %v481_v48  ;;  %v509_v6 = vand.u32 4294901760, %v508_v29  ;;  %v530_v20 = vand.u32 4294901760, %v529_v58  ;;  %v2559_v22 = vpack.c.bf16 %v3296_v40, %v3292_v36  ;;  %v3901_v58 = vld [vmem:[#allocation16_spill] sm:$0xff] }
  0x74   : > { %v516_v57 = vand.u32 4294901760, %v515_v26  ;;  %v2567_v62 = vpack.c.bf16 %v3334_v16, %v3328_v10  ;;  %v3001_v14 = vmov 0   ;;  %v2571_v36 = vpack.c.bf16 %v3342_v21, %v3339_v19 }
  0x75   : > { %2909 = vset.pattern.permute.xlu0 %v3001_v14  ;;  %2910 = vset.pattern.permute.xlu1 %v3001_v14  ;;  %v2575_v40 = vpack.c.bf16 %v3349_v4, %v3345_v30  ;;  %v2587_v10 = vpack.c.bf16 %v3368_v23, %v3365_v17  ;;  %v3891_v16 = vand.u32 4294901760, %v3094_v2  ;;  %v1062_v47 = vsel %vm261_vm0, %v3899_v9, 0 }
  0x76   : > { %2522 = vmatpush3.bf16.msra.mxu0 %v3320_v0  ;;  %1026 = vperm.xlu0 %2909, %v228_v53   ;;  %v1110_v42 = vand.u32 4294901760, %v1062_v47 }
  0x77   : > { %2524 = vmatprep.subr.bf16.mxu0 %v3322_v8 }
  0x7a   : > { %2526 = vmatpush3.bf16.msra.mxu0 %v3322_v8 }
  0x7b   : > { %2528 = vmatprep.subr.bf16.mxu0 %v2527_v59 }
  0x7d   : > { %2108 = vmatmul.mubr.f32.vlgmr.msra.gmra.mrb[0].mxu0 %v414_v3  ;;  %v501_v3 = vsub.f32 %v3355_v5, %v500_v12  ;;  %v2551_v12 = vpack.c.bf16 %v516_v57, %v509_v6  ;;  %v3900_v6 = vld [vmem:[#allocation15_spill] sm:$0xff] }
  0x7e   : > { %2530 = vmatpush3.bf16.msra.mxu0 %v2527_v59  ;;  %2142 = vmatprep.mubr.f32.mxu0 %v3090_v1  ;;  %v1065_v57 = vsel %vm261_vm0, %v3900_v6, 0  ;;  %v3907_v6 = vld [vmem:[#allocation22_spill] sm:$0xff] }
  0x7f   : > { %2532 = vmatprep.subr.bf16.mxu0 %v2531_v28  ;;  %v502_v25 = vand.u32 4294901760, %v501_v3 }
  0x81   : > { %v2547_v24 = vpack.c.bf16 %v502_v25, %v495_v56 }
  0x82   : > { %2534 = vmatpush3.bf16.msra.mxu0 %v2531_v28  ;;  %v522_v28 = vsub.f32 %v3365_v17, %v521_v18  ;;  %v2563_v18 = vpack.c.bf16 %v3313_v61, %v3310_v60  ;;  %v2579_v60 = vpack.c.bf16 %v3355_v5, %v3352_v31  ;;  %v2583_v61 = vpack.c.bf16 %v3362_v37, %v3358_v34 }
  0x83   : > { %2536 = vmatprep.subr.bf16.mxu0 %v2535_v46  ;;  %v3002_v34 = vmov 0.0|0.0  }
  0x84   : > { %v523_v11 = vand.u32 4294901760, %v522_v28  ;;  %2711 = vmatprep.subr.bf16.mxu1 %v3002_v34 }
  0x86   : > { %2538 = vmatpush3.bf16.msra.mxu0 %v2535_v46  ;;  %v2555_v59 = vpack.c.bf16 %v530_v20, %v523_v11  ;;  %v1059_v46 = vsel %vm261_vm0, %v3898_v35, 0 }
  0x87   : > { %2540 = vmatprep.subr.bf16.mxu0 %v2539_v54  ;;  %v1107_v52 = vand.u32 4294901760, %v1059_v46 }
  0x89   : > { %v3534_v29 = vsub.f32 %v1059_v46, %v1107_v52 }
  0x8a   : > { %2542 = vmatpush3.bf16.msra.mxu0 %v2539_v54 }
  0x8b   : > { %2544 = vmatprep.subr.bf16.mxu0 %v2543_v55  ;;  %v1216_v25 = vand.u32 4294901760, %v3534_v29 }
  0x8d   : > { %v1217_v28 = vsub.f32 %v3534_v29, %v1216_v25 }
  0x8e   : > { %2546 = vmatpush3.bf16.msra.mxu0 %v2543_v55  ;;  %v3536_v55 = vsub.f32 %v1062_v47, %v1110_v42 }
  0x8f   : > { %2548 = vmatprep.subr.bf16.mxu0 %v2547_v24  ;;  %v1218_v11 = vand.u32 4294901760, %v1217_v28  ;;  %v3906_v28 = vld [vmem:[#allocation21_spill] sm:$0xff] }
  0x90   : > { %v1223_v26 = vand.u32 4294901760, %v3536_v55 }
  0x92   : > { %2550 = vmatpush3.bf16.msra.mxu0 %v2547_v24  ;;  %v1224_v24 = vsub.f32 %v3536_v55, %v1223_v26 }
  0x93   : > { %2552 = vmatprep.subr.bf16.mxu0 %v2551_v12 }
  0x94   : > { %v1225_v20 = vand.u32 4294901760, %v1224_v24  ;;  %v1083_v24 = vsel %vm261_vm0, %v3906_v28, 0 }
  0x96   : > { %2554 = vmatpush3.bf16.msra.mxu0 %v2551_v12  ;;  %v1068_v12 = vsel %vm261_vm0, %v3901_v58, 0 }
  0x97   : > { %2556 = vmatprep.subr.bf16.mxu0 %v2555_v59 }
  0x9a   : > { %2558 = vmatpush3.bf16.msra.mxu0 %v2555_v59  ;;  %v1113_v59 = vand.u32 4294901760, %v1065_v57 }
  0x9b   : > { %2560 = vmatprep.subr.bf16.mxu0 %v2559_v22 }
  0x9c   : > { %v3555_v53 = vsub.f32 %v1065_v57, %v1113_v59  ;;  %v1086_v57 = vsel %vm261_vm0, %v3907_v6, 0 }
  0x9d   : > { %2143 = vmatmul.mubr.f32.vlgmr.msra.gmra.mrb[0].mxu0 %v3247_v38 }
  0x9e   : > { %2562 = vmatpush3.bf16.msra.mxu0 %v2559_v22  ;;  %2177 = vmatprep.mubr.f32.mxu0 %v3094_v2  ;;  %v3892_v2 = vand.u32 4294901760, %v3264_v45  ;;  %v1116_v22 = vand.u32 4294901760, %v1068_v12 }
  0x9f   : > { %2564 = vmatprep.subr.bf16.mxu0 %v2563_v18 }
  0xa2   : > { %2566 = vmatpush3.bf16.msra.mxu0 %v2563_v18  ;;  %v2718_v18 = vpack.c.bf16 %v1225_v20, %v1218_v11  ;;  %v1131_v11 = vand.u32 4294901760, %v1083_v24  ;;  %v1134_v20 = vand.u32 4294901760, %v1086_v57 }
  0xa3   : > { %2568 = vmatprep.subr.bf16.mxu0 %v2567_v62 }
  0xa6   : > { %2570 = vmatpush3.bf16.msra.mxu0 %v2567_v62  ;;  %v3557_v62 = vsub.f32 %v1068_v12, %v1116_v22 }
  0xa7   : > { %2572 = vmatprep.subr.bf16.mxu0 %v2571_v36 }
  0xaa   : > { %2574 = vmatpush3.bf16.msra.mxu0 %v2571_v36  ;;  %v1230_v36 = vand.u32 4294901760, %v3555_v53 }
  0xab   : > { %2576 = vmatprep.subr.bf16.mxu0 %v2575_v40 }
  0xae   : > { %2578 = vmatpush3.bf16.msra.mxu0 %v2575_v40  ;;  %v1237_v40 = vand.u32 4294901760, %v3557_v62 }
  0xaf   : > { %2580 = vmatprep.subr.bf16.mxu0 %v2579_v60 }
  0xb2   : > { %2582 = vmatpush3.bf16.msra.mxu0 %v2579_v60  ;;  %v1231_v60 = vsub.f32 %v3555_v53, %v1230_v36 }
  0xb3   : > { %2584 = vmatprep.subr.bf16.mxu0 %v2583_v61 }
  0xb6   : > { %2586 = vmatpush3.bf16.msra.mxu0 %v2583_v61  ;;  %v1238_v61 = vsub.f32 %v3557_v62, %v1237_v40 }
  0xb7   : > { %2588 = vmatprep.subr.bf16.mxu0 %v2587_v10 }
  0xba   : > { %2590 = vmatpush3.bf16.msra.mxu0 %v2587_v10  ;;  %v3902_v10 = vld [vmem:[#allocation17_spill] sm:$0xff] }
  0xbb   : > { %2592 = vmatprep.subr.bf16.mxu0 %v3234_v33 }
  0xbd   : > { %2178 = vmatmul.mubr.f32.vlgmr.msra.gmra.mrb[0].mxu0 %v3264_v45  ;;  %v3893_v45 = vld [vmem:[#allocation25_spill] sm:$0xff] }
  0xbe   : > { %2594 = vmatpush3.bf16.msra.mxu0 %v3234_v33  ;;  %2212 = vmatprep.mubr.f32.mxu0 %v3891_v16  ;;  %v1071_v16 = vsel %vm261_vm0, %v3902_v10, 0 }
  0xbf   : > { %2596 = vmatprep.subr.bf16.mxu0 %v3236_v13 }
  0xc2   : > { %2598 = vmatpush3.bf16.msra.mxu0 %v3236_v13 }
  0xc3   : > { %2600 = vmatprep.subr.bf16.mxu0 %v3250_v39 }
  0xc6   : > { %2602 = vmatpush3.bf16.msra.mxu0 %v3250_v39 }
  0xc7   : > { %2604 = vmatprep.subr.bf16.mxu0 %v3261_v43 }
  0xca   : > { %2606 = vmatpush3.bf16.msra.mxu0 %v3261_v43 }
  0xcb   : > { %2608 = vmatprep.subr.bf16.mxu0 %v3299_v44 }
  0xce   : > { %2610 = vmatpush3.bf16.msra.mxu0 %v3299_v44 }
  0xcf   : > { %2612 = vmatprep.subr.bf16.mxu0 %v3318_v63 }
  0xd2   : > { %2614 = vmatpush3.bf16.msra.mxu0 %v3318_v63 }
  0xd3   : > { %2616 = vmatprep.subr.bf16.mxu0 %v3320_v0 }
  0xd6   : > { %2618 = vmatpush3.bf16.msra.mxu0 %v3320_v0 }
  0xd7   : > { %2620 = vmatprep.subr.bf16.mxu0 %v3322_v8 }
  0xda   : > { %2622 = vmatpush3.bf16.msra.mxu0 %v3322_v8 }
  0xdb   : > { %2624 = vmatprep.subr.bf16.mxu0 %v3385_v51 }
  0xdd   : > { %2213 = vmatmul.mubr.f32.vlgmr.msra.gmra.mrb[0].mxu0 %v3892_v2  ;;  %v3903_v2 = vld [vmem:[#allocation18_spill] sm:$0xff] }
  0xde   : > { %2626 = vmatpush3.bf16.msra.mxu0 %v3385_v51  ;;  %2247 = vmatprep.mubr.f32.mxu0 %v3090_v1  ;;  %v3896_v51 = vld [vmem:[#allocation11_spill] sm:$0xff] }
  0xdf   : > { %2628 = vmatprep.subr.bf16.mxu0 %v3387_v50 }
  0xe2   : > { %2630 = vmatpush3.bf16.msra.mxu0 %v3387_v50 }
  0xe3   : > { %2632 = vmatprep.subr.bf16.mxu0 %v3389_v49 }
  0xe6   : > { %2634 = vmatpush3.bf16.msra.mxu0 %v3389_v49 }
  0xe7   : > { %2636 = vmatprep.subr.bf16.mxu0 %v3391_v32 }
  0xea   : > { %2638 = vmatpush3.bf16.msra.mxu0 %v3391_v32 }
  0xeb   : > { %2640 = vmatprep.subr.bf16.mxu0 %v3393_v27 }
  0xee   : > { %2642 = vmatpush3.bf16.msra.mxu0 %v3393_v27 }
  0xef   : > { %2644 = vmatprep.subr.bf16.mxu0 %v3397_v41 }
  0xf2   : > { %2646 = vmatpush3.bf16.msra.mxu0 %v3397_v41 }
  0xf3   : > { %2648 = vmatprep.subr.bf16.mxu0 %v3399_v7 }
  0xf6   : > { %2650 = vmatpush3.bf16.msra.mxu0 %v3399_v7 }
  0xf7   : > { %2652 = vmatprep.subr.bf16.mxu0 %v3893_v45 }
  0xfa   : > { %2654 = vmatpush3.bf16.msra.mxu0 %v3893_v45  ;;  %v1074_v45 = vsel %vm261_vm0, %v3903_v2, 0 }
  0xfb   : > { %2656 = vmatprep.subr.bf16.mxu0 %v3234_v33 }
  0xfd   : > { %2248 = vmatmul.mubr.f32.vlgmr.msra.gmra.mrb[0].mxu0 %v3247_v38 }
  0xfe   : > { %2658 = vmatpush3.bf16.msra.mxu0 %v3234_v33  ;;  %2282 = vmatprep.mubr.f32.mxu0 %v3090_v1  ;;  %v3894_v1 = vld [vmem:[#allocation9_spill] sm:$0xff]  ;;  %v3895_v33 = vld [vmem:[#allocation10_spill] sm:$0xff] }
  0xff   : > { %2660 = vmatprep.subr.bf16.mxu0 %v3236_v13  ;;  %v1047_v7 = vsel %vm261_vm0, %v3894_v1, 0  ;;  %v1232_v1 = vand.u32 4294901760, %v1231_v60 }
 0x102   : > { %2662 = vmatpush3.bf16.msra.mxu0 %v3236_v13  ;;  %v1050_v13 = vsel %vm261_vm0, %v3895_v33, 0  ;;  %v1119_v33 = vand.u32 4294901760, %v1071_v16 }
 0x103   : > { %2664 = vmatprep.subr.bf16.mxu0 %v3250_v39  ;;  %v1098_v41 = vand.u32 4294901760, %v1050_v13 }
 0x105   : > { %v3501_v27 = vsub.f32 %v1050_v13, %v1098_v41  ;;  %v1122_v13 = vand.u32 4294901760, %v1074_v45 }
 0x106   : > { %2666 = vmatpush3.bf16.msra.mxu0 %v3250_v39  ;;  %v1095_v39 = vand.u32 4294901760, %v1047_v7 }
 0x107   : > { %2668 = vmatprep.subr.bf16.mxu0 %v3261_v43  ;;  %v1195_v49 = vand.u32 4294901760, %v3501_v27  ;;  %v3622_v60 = vpack.c.bf16 %v1122_v13, %v1119_v33 }
 0x108   : > { %v3538_v56 = vpack.c.bf16 %v1098_v41, %v1095_v39  ;;  %v3576_v41 = vsub.f32 %v1071_v16, %v1119_v33 }
 0x109   : > { %v1196_v50 = vsub.f32 %v3501_v27, %v1195_v49 }
 0x10a   : > { %2670 = vmatpush3.bf16.msra.mxu0 %v3261_v43  ;;  %v3499_v43 = vsub.f32 %v1047_v7, %v1095_v39  ;;  %v1239_v7 = vand.u32 4294901760, %v1238_v61 }
 0x10b   : > { %2672 = vmatprep.subr.bf16.mxu0 %v3299_v44  ;;  %v1197_v19 = vand.u32 4294901760, %v1196_v50  ;;  %v3580_v50 = vpack.c.bf16 %v1110_v42, %v1107_v52 }
 0x10c   : > { %v1188_v32 = vand.u32 4294901760, %v3499_v43  ;;  %v2721_v39 = vpack.c.bf16 %v1239_v7, %v1232_v1  ;;  %v3909_v7 = vld [vmem:[#allocation24_spill] sm:$0xff] }
 0x10d   : > { %v1092_v33 = vsel %vm261_vm0, %v3909_v7, 0 }
 0x10e   : > { %2674 = vmatpush3.bf16.msra.mxu0 %v3299_v44  ;;  %v1053_v44 = vsel %vm261_vm0, %v3896_v51, 0  ;;  %v1244_v51 = vand.u32 4294901760, %v3576_v41 }
 0x10f   : > { %2676 = vmatprep.subr.bf16.mxu0 %v3318_v63  ;;  %v1101_v21 = vand.u32 4294901760, %v1053_v44 }
 0x111   : > { %v3515_v31 = vsub.f32 %v1053_v44, %v1101_v21 }
 0x112   : > { %2678 = vmatpush3.bf16.msra.mxu0 %v3318_v63  ;;  %v3897_v63 = vld [vmem:[#allocation12_spill] sm:$0xff] }
 0x113   : > { %2680 = vmatprep.subr.bf16.mxu0 %v3320_v0  ;;  %v1202_v37 = vand.u32 4294901760, %v3515_v31 }
 0x115   : > { %v1203_v23 = vsub.f32 %v3515_v31, %v1202_v37 }
 0x116   : > { %2682 = vmatpush3.bf16.msra.mxu0 %v3320_v0  ;;  %v1056_v0 = vsel %vm261_vm0, %v3897_v63, 0  ;;  %v1245_v63 = vsub.f32 %v3576_v41, %v1244_v51 }
 0x117   : > { %2684 = vmatprep.subr.bf16.mxu0 %v3322_v8  ;;  %v1104_v30 = vand.u32 4294901760, %v1056_v0  ;;  %v1204_v54 = vand.u32 4294901760, %v1203_v23 }
 0x119   : > { %v3517_v5 = vsub.f32 %v1056_v0, %v1104_v30  ;;  %v3559_v14 = vpack.c.bf16 %v1104_v30, %v1101_v21  ;;  %v3905_v21 = vld [vmem:[#allocation20_spill] sm:$0xff] }
 0x11a   : > { %2686 = vmatpush3.bf16.msra.mxu0 %v3322_v8  ;;  %v1080_v30 = vsel %vm261_vm0, %v3905_v21, 0 }
 0x11b   : > { %2687 = vmatprep.subr.bf16.mxu0 %v3002_v34  ;;  %v1209_v17 = vand.u32 4294901760, %v3517_v5  ;;  %v1128_v35 = vand.u32 4294901760, %v1080_v30 }
 0x11d   : > { %2283 = vmatmul.mubr.f32.vlgmr.msra.gmra.mrb[0].mxu0 %v3247_v38  ;;  %v1189_v38 = vsub.f32 %v3499_v43, %v1188_v32  ;;  %v1210_v15 = vsub.f32 %v3517_v5, %v1209_v17  ;;  %v3599_v47 = vsub.f32 %v1080_v30, %v1128_v35 }
 0x11f   : > { %v1190_v8 = vand.u32 4294901760, %v1189_v38  ;;  %v1211_v48 = vand.u32 4294901760, %v1210_v15  ;;  %v3578_v38 = vsub.f32 %v1074_v45, %v1122_v13  ;;  %v1265_v52 = vand.u32 4294901760, %v3599_v47  ;;  %v3908_v45 = vld [vmem:[#allocation23_spill] sm:$0xff] }
 0x120   : > { %v1089_v1 = vsel %vm261_vm0, %v3908_v45, 0 }
 0x121   : > { %v2712_v4 = vpack.c.bf16 %v1197_v19, %v1190_v8  ;;  %v2715_v3 = vpack.c.bf16 %v1211_v48, %v1204_v54  ;;  %v1251_v44 = vand.u32 4294901760, %v3578_v38  ;;  %v3904_v8 = vld [vmem:[#allocation19_spill] sm:$0xff]  ;;  %v3601_v54 = vpack.c.bf16 %v1116_v22, %v1113_v59 }
 0x122   : > { %v1077_v19 = vsel %vm261_vm0, %v3904_v8, 0  ;;  %v3618_v22 = vsub.f32 %v1083_v24, %v1131_v11  ;;  %v3004_v24 = vmov 0.0  }
 0x123   : > { %2713 = vmatpush3.bf16.xpose.msra.mxu1 %v2712_v4  ;;  %2689 = vmatpush3.bf16.xpose.msra.mxu0 %v3538_v56  ;;  %v1252_v0 = vsub.f32 %v3578_v38, %v1251_v44  ;;  %v1246_v4 = vand.u32 4294901760, %v1245_v63  ;;  %v1125_v15 = vand.u32 4294901760, %v1077_v19  ;;  %v1137_v63 = vand.u32 4294901760, %v1089_v1  ;;  %225 = vst.msk [vmem:[#allocation3] sm:$0xff] %vm224_vm2, %v3004_v24 }
 0x124   : > { %2714 = vmatprep.subr.bf16.mxu1 %v3002_v34  ;;  %2690 = vmatprep.subr.bf16.mxu0 %v3002_v34  ;;  %v1272_v61 = vand.u32 4294901760, %v3618_v22 }
 0x125   : > { %v1253_v23 = vand.u32 4294901760, %v1252_v0  ;;  %v3597_v9 = vsub.f32 %v1077_v19, %v1125_v15  ;;  %v1140_v0 = vand.u32 4294901760, %v1092_v33  ;;  %v3639_v19 = vsub.f32 %v1089_v1, %v1137_v63  ;;  %2352 = vmatprep.mubr.msk.f32.mxu1 %vm3003_vm1, %v3004_v24  ;;  %2317 = vmatprep.mubr.msk.f32.mxu0 %vm3003_vm1, %v3004_v24 }
 0x126   : > { %v1273_v16 = vsub.f32 %v3618_v22, %v1272_v61  ;;  %v3643_v30 = vpack.c.bf16 %v1128_v35, %v1125_v15 }
 0x127   : > { %v2724_v46 = vpack.c.bf16 %v1253_v23, %v1246_v4  ;;  %v1258_v48 = vand.u32 4294901760, %v3597_v9  ;;  %v3641_v21 = vsub.f32 %v1092_v33, %v1140_v0  ;;  %v1286_v4 = vand.u32 4294901760, %v3639_v19 }
 0x128   : > { %v1274_v13 = vand.u32 4294901760, %v1273_v16  ;;  %v3665_v6 = vpack.c.bf16 %v1140_v0, %v1137_v63 }
 0x129   : > { %v1259_v42 = vsub.f32 %v3597_v9, %v1258_v48  ;;  %v3869_v23 = vand.u32 4294901760, %v3641_v21 }
 0x12b   : > { %2716 = vmatpush3.bf16.xpose.msra.mxu1 %v2715_v3  ;;  %2692 = vmatpush3.bf16.xpose.msra.mxu0 %v3559_v14  ;;  %v1266_v3 = vsub.f32 %v3599_v47, %v1265_v52  ;;  %v1260_v58 = vand.u32 4294901760, %v1259_v42  ;;  %v1294_v15 = vsub.f32 %v3641_v21, %v3869_v23 }
 0x12c   : > { %2717 = vmatprep.subr.bf16.mxu1 %v3002_v34  ;;  %2693 = vmatprep.subr.bf16.mxu0 %v3002_v34 }
 0x12d   : > { %v1267_v12 = vand.u32 4294901760, %v1266_v3  ;;  %v1295_v42 = vand.u32 4294901760, %v1294_v15  ;;  %v3656_v3 = vpack.c.bf16 %v1134_v20, %v1131_v11  ;;  %v3910_v15 = vld [vmem:[#allocation8_spill] sm:$0xff] }
 0x12f   : > { %v2727_v59 = vpack.c.bf16 %v1267_v12, %v1260_v58 }
 0x133   : > { %2719 = vmatpush3.bf16.xpose.msra.mxu1 %v2718_v18  ;;  %2695 = vmatpush3.bf16.xpose.msra.mxu0 %v3580_v50  ;;  %v3620_v18 = vsub.f32 %v1086_v57, %v1134_v20 }
 0x134   : > { %2720 = vmatprep.subr.bf16.mxu1 %v3002_v34  ;;  %2696 = vmatprep.subr.bf16.mxu0 %v3002_v34 }
 0x135   : > { %v1279_v10 = vand.u32 4294901760, %v3620_v18 }
 0x137   : > { %v1280_v2 = vsub.f32 %v3620_v18, %v1279_v10 }
 0x13b   : > { %2722 = vmatpush3.bf16.xpose.msra.mxu1 %v2721_v39  ;;  %2698 = vmatpush3.bf16.xpose.msra.mxu0 %v3601_v54  ;;  %v1281_v39 = vand.u32 4294901760, %v1280_v2 }
 0x13c   : > { %2723 = vmatprep.subr.bf16.mxu1 %v3002_v34  ;;  %2699 = vmatprep.subr.bf16.mxu0 %v3002_v34 }
 0x13d   : > { %v2730_v8 = vpack.c.bf16 %v1281_v39, %v1274_v13 }
 0x143   : > { %2725 = vmatpush3.bf16.xpose.msra.mxu1 %v2724_v46  ;;  %2701 = vmatpush3.bf16.xpose.msra.mxu0 %v3622_v60  ;;  %v1287_v46 = vsub.f32 %v3639_v19, %v1286_v4 }
 0x144   : > { %2726 = vmatprep.subr.bf16.mxu1 %v3002_v34  ;;  %2702 = vmatprep.subr.bf16.mxu0 %v3002_v34 }
 0x145   : > { %v1288_v35 = vand.u32 4294901760, %v1287_v46 }
 0x147   : > { %v2733_v28 = vpack.c.bf16 %v1295_v42, %v1288_v35  ;;  %v317_v35 = vmul.f32 %v3910_v15, %v3910_v15 }
 0x14b   : > { %2728 = vmatpush3.bf16.xpose.msra.mxu1 %v2727_v59  ;;  %2704 = vmatpush3.bf16.xpose.msra.mxu0 %v3643_v30 }
 0x14c   : > { %2729 = vmatprep.subr.bf16.mxu1 %v3002_v34  ;;  %2705 = vmatprep.subr.bf16.mxu0 %v3002_v34 }
 0x153   : > { %2731 = vmatpush3.bf16.xpose.msra.mxu1 %v2730_v8  ;;  %2707 = vmatpush3.bf16.xpose.msra.mxu0 %v3656_v3 }
 0x154   : > { %2732 = vmatprep.subr.bf16.mxu1 %v3002_v34  ;;  %2708 = vmatprep.subr.bf16.mxu0 %v3002_v34 }
 0x15b   : > { %2734 = vmatpush3.bf16.xpose.msra.mxu1 %v2733_v28  ;;  %2710 = vmatpush3.bf16.xpose.msra.mxu0 %v3665_v6 }
 0x15c   : > { %2735 = vmatprep.subr.bf16.mxu1 %v3002_v34 }
 0x1f0   : > { %v2284_v57 = vpop.f32.mrb[0].mxu0 }
 0x1f1   : > { %v993_v58 = vpop.f32.mrb[1].mxu0  ;;  %v1022_v28 = vmul.f32 2.0, %v2284_v57 }
 0x1f2   : > { %v1003_v12 = vsel %vm261_vm0, %v993_v58, -inf }
 0x1f3   : > { %v1004_v11 = vrot.slane %v1003_v12, 4 }
 0x1f5   : > { %v1005_v20 = vmax.f32 %v1003_v12, %v1004_v11  ;;  %v3911_v12 = vld [vmem:[#allocation7_spill] sm:$0xff] }
 0x1f6   : > { %v318_v11 = vmul.f32 %v317_v35, %v3911_v12 }
 0x1f7   : > { %v1006_v59 = vrot.slane %v1005_v20, 2 }
 0x1f9   : > { %v1007_v16 = vmax.f32 %v1005_v20, %v1006_v59  ;;  %v1023_v20 = vsub.f32 %v318_v11, %v1022_v28 }
 0x1fb   : > { %v1008_v2 = vrot.slane %v1007_v16, 1 }
 0x1fd   : > { %v1009_v45 = vmax.f32 %v1007_v16, %v1008_v2 }
 0x1ff   : > { %v1010_v1 = vsub.f32 %v993_v58, %v1009_v45  ;;  %v1027_v58 = vpop.permute.xlu0 %1026 }
 0x200   : > { %v1029_v59 = vadd.f32 %v1027_v58, %v1023_v20  ;;  %v2739_v58 = vpack.c.bf16 %v3517_v5, %v3515_v31  ;;  %v2796_v31 = vpack.c.bf16 %v1251_v44, %v1244_v51  ;;  %v2799_v5 = vpack.c.bf16 %v1265_v52, %v1258_v48 }
 0x201   : > { %v1011_v7 = vmul.f32 1.442695, %v1010_v1 }
 0x202   : > { %v1030_v45 = vmax.f32 %v1029_v59, 0.0 }
 0x203   : > { %2913 = vpow2.f32 %v1011_v7 }
 0x20d   : > { %v2914_v33 = vpop.eup %2913 }
 0x20e   : > { %v1013_v13 = vsel %vm261_vm0, %v2914_v33, 0.0 }
 0x20f   : > { %v1014_v39 = vrot.slane %v1013_v13, 4 }
 0x211   : > { %v1015_v63 = vadd.f32 %v1014_v39, %v1013_v13 }
 0x213   : > { %v1016_v0 = vrot.slane %v1015_v63, 2 }
 0x215   : > { %v1017_v8 = vadd.f32 %v1016_v0, %v1015_v63 }
 0x217   : > { %v1018_v46 = vrot.slane %v1017_v8, 1 }
 0x219   : > { %v1019_v42 = vadd.f32 %v1018_v46, %v1017_v8 }
 0x21b   : > { %2915 = vrcp.f32 %v1019_v42 }
 0x225   : > { %v2916_v16 = vpop.eup %2915 }
 0x226   : > { %v1021_v2 = vmul.f32 %v2916_v16, %v2914_v33  ;;  %v2736_v33 = vpack.c.bf16 %v3501_v27, %v3499_v43  ;;  %v2742_v16 = vpack.c.bf16 %v3536_v55, %v3534_v29  ;;  %v2790_v27 = vpack.c.bf16 %v1223_v26, %v1216_v25 }
 0x228   : > { %v1031_v1 = vmul.f32 %v1021_v2, %v1021_v2 }
 0x22a   : > { %v1032_v7 = vmul.f32 %v1031_v1, %v1030_v45  ;;  %v2748_v45 = vpack.c.bf16 %v3578_v38, %v3576_v41  ;;  %v2751_v1 = vpack.c.bf16 %v3599_v47, %v3597_v9 }
 0x22c   : > { %v1033_v13 = vsel %vm261_vm0, %v1032_v7, 0.0  ;;  %v2754_v7 = vpack.c.bf16 %v3620_v18, %v3618_v22 }
 0x22d   : > { %v1034_v39 = vrot.slane %v1033_v13, 4 }
 0x22f   : > { %v1035_v63 = vadd.f32 %v1034_v39, %v1033_v13  ;;  %v2757_v13 = vpack.c.bf16 %v3641_v21, %v3639_v19  ;;  %v2784_v39 = vpack.c.bf16 %v1195_v49, %v1188_v32  ;;  %v2793_v49 = vpack.c.bf16 %v1237_v40, %v1230_v36 }
 0x231   : > { %v1036_v0 = vrot.slane %v1035_v63, 2 }
 0x233   : > { %v1037_v23 = vadd.f32 %v1036_v0, %v1035_v63  ;;  %v2787_v63 = vpack.c.bf16 %v1209_v17, %v1202_v37  ;;  %v1738_v0 = vld [vmem:[#allocation3] sm:$0xff]  ;;  %v2802_v37 = vpack.c.bf16 %v1279_v10, %v1272_v61  ;;  %v3912_v17 = vand.u32 4294901760, %v3641_v21 }
 0x235   : > { %v1038_v15 = vrot.slane %v1037_v23, 1  ;;  %v2805_v29 = vpack.c.bf16 %v3912_v17, %v1286_v4 }
 0x237   : > { %v1039_v8 = vadd.f32 %v1038_v15, %v1037_v23 }
 0x239   : > { %v1040_v46 = vmax.f32 %v1039_v8, 1e-24 }
 0x23b   : > { %2917 = vrsqrt.f32 %v1040_v46 }
 0x245   : > { %v2918_v57 = vpop.eup %2917 }
 0x246   : > { %v1042_v35 = vmul.f32 %v2918_v57, %v1021_v2  ;;  %v2745_v2 = vpack.c.bf16 %v3557_v62, %v3555_v53 }
 0x248   : > { %v1739_v42 = vsel %vm261_vm0, %v1042_v35, 0.0  ;;  %v1044_v28 = vsel %vm261_vm0, %v1042_v35, 0 }
 0x249   : > { %1740 = vadd.xlane.f32.xlu0 %v1739_v42  ;;  %v3678_v12 = vand.u32 4294901760, %v1044_v28 }
 0x24b   : > { %v1176_v11 = vsub.f32 %v1044_v28, %v3678_v12  ;;  %2353 = vmatmul.mubr.f32.vlgmr.msra.gmra.mrb[0].mxu1 %v3678_v12 }
 0x24c   : > { %2737 = vmatpush3.bf16.xpose.msra.mxu1 %v2736_v33  ;;  %2387 = vmatprep.mubr.msk.f32.mxu1 %vm3003_vm1, %v3004_v24 }
 0x24d   : > { %2738 = vmatprep.subr.bf16.mxu1 %v3002_v34  ;;  %v1177_v23 = vand.u32 4294901760, %v1176_v11 }
 0x24f   : > { %v1178_v20 = vsub.f32 %v1176_v11, %v1177_v23 }
 0x251   : > { %v1179_v59 = vand.u32 4294901760, %v1178_v20 }
 0x253   : > { %2318 = vmatmul.mubr.f32.vlgmr.msra.gmra.mrb[2].mxu0 %v1179_v59 }
 0x254   : > { %2740 = vmatpush3.bf16.xpose.msra.mxu1 %v2739_v58 }
 0x255   : > { %2741 = vmatprep.subr.bf16.mxu1 %v3002_v34 }
 0x25c   : > { %2743 = vmatpush3.bf16.xpose.msra.mxu1 %v2742_v16 }
 0x25d   : > { %2744 = vmatprep.subr.bf16.mxu1 %v3002_v34 }
 0x264   : > { %2746 = vmatpush3.bf16.xpose.msra.mxu1 %v2745_v2 }
 0x265   : > { %2747 = vmatprep.subr.bf16.mxu1 %v3002_v34 }
 0x26c   : > { %2749 = vmatpush3.bf16.xpose.msra.mxu1 %v2748_v45 }
 0x26d   : > { %2750 = vmatprep.subr.bf16.mxu1 %v3002_v34 }
 0x274   : > { %2752 = vmatpush3.bf16.xpose.msra.mxu1 %v2751_v1 }
 0x275   : > { %2753 = vmatprep.subr.bf16.mxu1 %v3002_v34 }
 0x27c   : > { %2755 = vmatpush3.bf16.xpose.msra.mxu1 %v2754_v7 }
 0x27d   : > { %2756 = vmatprep.subr.bf16.mxu1 %v3002_v34 }
 0x284   : > { %2758 = vmatpush3.bf16.xpose.msra.mxu1 %v2757_v13 }
 0x285   : > { %2759 = vmatprep.subr.bf16.mxu1 %v3002_v34 }
 0x28b   : > { %2388 = vmatmul.mubr.f32.vlgmr.msra.gmra.mrb[0].mxu1 %v1176_v11 }
 0x28c   : > { %2761 = vmatpush3.bf16.xpose.msra.mxu1 %v3538_v56  ;;  %2422 = vmatprep.mubr.msk.f32.mxu1 %vm3003_vm1, %v3004_v24 }
 0x28d   : > { %2762 = vmatprep.subr.bf16.mxu1 %v3002_v34 }
 0x294   : > { %2764 = vmatpush3.bf16.xpose.msra.mxu1 %v3559_v14 }
 0x295   : > { %2765 = vmatprep.subr.bf16.mxu1 %v3002_v34 }
 0x29c   : > { %2767 = vmatpush3.bf16.xpose.msra.mxu1 %v3580_v50 }
 0x29d   : > { %2768 = vmatprep.subr.bf16.mxu1 %v3002_v34 }
 0x2a4   : > { %2770 = vmatpush3.bf16.xpose.msra.mxu1 %v3601_v54 }
 0x2a5   : > { %2771 = vmatprep.subr.bf16.mxu1 %v3002_v34 }
 0x2ac   : > { %2773 = vmatpush3.bf16.xpose.msra.mxu1 %v3622_v60 }
 0x2ad   : > { %2774 = vmatprep.subr.bf16.mxu1 %v3002_v34 }
 0x2b4   : > { %2776 = vmatpush3.bf16.xpose.msra.mxu1 %v3643_v30 }
 0x2b5   : > { %2777 = vmatprep.subr.bf16.mxu1 %v3002_v34 }
 0x2bc   : > { %2779 = vmatpush3.bf16.xpose.msra.mxu1 %v3656_v3 }
 0x2bd   : > { %2780 = vmatprep.subr.bf16.mxu1 %v3002_v34 }
 0x2c4   : > { %2782 = vmatpush3.bf16.xpose.msra.mxu1 %v3665_v6 }
 0x2c5   : > { %2783 = vmatprep.subr.bf16.mxu1 %v3002_v34 }
 0x2cb   : > { %2423 = vmatmul.mubr.f32.vlgmr.msra.gmra.mrb[0].mxu1 %v1177_v23 }
 0x2cc   : > { %2785 = vmatpush3.bf16.xpose.msra.mxu1 %v2784_v39  ;;  %2457 = vmatprep.mubr.msk.f32.mxu1 %vm3003_vm1, %v3004_v24 }
 0x2cd   : > { %2786 = vmatprep.subr.bf16.mxu1 %v3002_v34 }
 0x2d4   : > { %2788 = vmatpush3.bf16.xpose.msra.mxu1 %v2787_v63 }
 0x2d5   : > { %2789 = vmatprep.subr.bf16.mxu1 %v3002_v34 }
 0x2d6   : > { %v1741_v43 = vpop.xlane.xlu0 %1740 }
 0x2d7   : > { %v1742_v15 = vadd.f32 %v1741_v43, %v1738_v0 }
 0x2d9   : > { %1744 = vst.msk [vmem:[#allocation3] sm:$0xff] %vm224_vm2, %v1742_v15 }
 0x2dc   : > { %2791 = vmatpush3.bf16.xpose.msra.mxu1 %v2790_v27 }
 0x2dd   : > { %2792 = vmatprep.subr.bf16.mxu1 %v3002_v34 }
 0x2e0   : > { %v1750_v32 = vld [vmem:[#allocation3] sm:$0xff] }
 0x2e1   : > { %1753 = vperm.xlu1 %2910, %v1750_v32  }
 0x2e4   : > { %2794 = vmatpush3.bf16.xpose.msra.mxu1 %v2793_v49 }
 0x2e5   : > { %2795 = vmatprep.subr.bf16.mxu1 %v3002_v34 }
 0x2ec   : > { %2797 = vmatpush3.bf16.xpose.msra.mxu1 %v2796_v31 }
 0x2ed   : > { %2798 = vmatprep.subr.bf16.mxu1 %v3002_v34 }
 0x2f4   : > { %2800 = vmatpush3.bf16.xpose.msra.mxu1 %v2799_v5 }
 0x2f5   : > { %2801 = vmatprep.subr.bf16.mxu1 %v3002_v34 }
 0x2fc   : > { %2803 = vmatpush3.bf16.xpose.msra.mxu1 %v2802_v37 }
 0x2fd   : > { %2804 = vmatprep.subr.bf16.mxu1 %v3002_v34 }
 0x304   : > { %2806 = vmatpush3.bf16.xpose.msra.mxu1 %v2805_v29 }
 0x305   : > { %2807 = vmatprep.subr.bf16.mxu1 %v3002_v34 }
 0x30b   : > { %2458 = vmatmul.mubr.f32.vlgmr.msra.gmra.mrb[0].mxu1 %v3678_v12 }
 0x30c   : > { %2809 = vmatpush3.bf16.xpose.msra.mxu1 %v3538_v56  ;;  %2492 = vmatprep.mubr.msk.f32.mxu1 %vm3003_vm1, %v3004_v24  ;;  %v1749_v56 = vld [vmem:[%s3845_s2] sm:$0xff] }
 0x30d   : > { %2810 = vmatprep.subr.bf16.mxu1 %v3002_v34 }
 0x314   : > { %2812 = vmatpush3.bf16.xpose.msra.mxu1 %v3559_v14 }
 0x315   : > { %2813 = vmatprep.subr.bf16.mxu1 %v3002_v34 }
 0x31c   : > { %2815 = vmatpush3.bf16.xpose.msra.mxu1 %v3580_v50 }
 0x31d   : > { %2816 = vmatprep.subr.bf16.mxu1 %v3002_v34 }
 0x324   : > { %2818 = vmatpush3.bf16.xpose.msra.mxu1 %v3601_v54 }
 0x325   : > { %2819 = vmatprep.subr.bf16.mxu1 %v3002_v34 }
 0x326   : > { %v1181_v55 = vpop.f32.mrb[2].mxu0 }
 0x327   : > { %v2319_v25 = vpop.f32.mrb[3].mxu0 }
 0x32c   : > { %2821 = vmatpush3.bf16.xpose.msra.mxu1 %v3622_v60 }
 0x32d   : > { %2822 = vmatprep.subr.bf16.mxu1 %v3002_v34 }
 0x334   : > { %2824 = vmatpush3.bf16.xpose.msra.mxu1 %v3643_v30 }
 0x335   : > { %2825 = vmatprep.subr.bf16.mxu1 %v3002_v34 }
 0x33c   : > { %2827 = vmatpush3.bf16.xpose.msra.mxu1 %v3656_v3 }
 0x33d   : > { %2828 = vmatprep.subr.bf16.mxu1 %v3002_v34 }
 0x344   : > { %2830 = vmatpush3.bf16.xpose.msra.mxu1 %v3665_v6 }
 0x34b   : > { %2493 = vmatmul.mubr.f32.vlgmr.msra.gmra.mrb[0].mxu1 %v3678_v12 }
 0x360   : > { %v1754_v26 = vpop.permute.xlu1 %1753 }
 0x361   : > { %v1756_v62 = vmul.f32 %v1754_v26, %v1749_v56 }
 0x41e   : > { %v1731_v53 = vpop.f32.mrb[0].mxu1 }
 0x41f   : > { %v2831_v14 = vadd.f32 %v1731_v53, %v1181_v55  ;;  %v2494_v36 = vpop.f32.mrb[1].mxu1 }
 0x421   : > { %v1757_v40 = vsub.f32 %v2831_v14, %v1756_v62 }
 0x423   : > { %v1758_v41 = vmul.f32 %v1757_v40, %v1757_v40 }
 0x425   : > { %1759 = vadd.xlane.f32.xlu1 %v1758_v41 }
 0x4b2   : > { %v1760_v38 = vpop.xlane.xlu1 %1759 }
 0x4b3   : > { %v1761_v34 = vmax.f32 %v1760_v38, 1e-24 }
 0x4b5   : > { %2919 = vrsqrt.f32 %v1761_v34 }
 0x4bf   : > { %v2920_v50 = vpop.eup %2919 }
 0x4c0   : > { %v1763_v51 = vmul.f32 %v2920_v50, %v1757_v40 }
 0x4c2   : > { %1764 = vst [vmem:[%s210_s29] sm:$0xff] %v1763_v51 }
 0x4c3   : > { %2934 = shalt.err (!%p2931_p5)
}
 0x4c4   : > { %s2935_s12 = scalar_lea.hbm %s3796_s7, 128  ;;  %s2939_s21 = scalar_lea.hbm %s3847_s4, 256 }
 0x4c5   : > { %p2936_p6 = scmp.ne.s32.totalorder %s3796_s7, %s2935_s12  ;;  %p2940_p10 = scmp.lt.u32.totalorder %s3796_s7, %s3847_s4 }
 0x4c6   : > { %p2941_p11 = scmp.lt.u32.totalorder %s2939_s21, %s2935_s12  ;;  %p2943_p13 = scmp.lt.u32.totalorder %s2935_s12, %s3796_s7 }
 0x4c7   : > { %p2937_p7 = pnand %p2936_p6, %p3071_p4 }
 0x4c8   : > { %p2942_p12 = por %p2941_p11, %p2940_p10 }
 0x4c9   : > { %p2938_p9 = pneg %p2937_p7 }
 0x4ca   : > { %p2944_p0 = por %p2943_p13, %p2942_p12 }
 0x4cc   : > { %p2945_p1 = pnand %p2944_p0, %p2938_p9 }
 0x4ce   : > { %2948 = shalt.err (!%p2945_p1)
}
 0x4cf   : > { %2850 = dma.vmem_to_hbm [thread:$0]  (%p3071_p4), %s3798_s30, 128, %s3796_s7, %s1766_s8  }
 0x4d0 PF: > { %p2856_p2 = scmp.ge.s32.totalorder %s2999_s20, 2  ;;  %s1791_s26 = sand.u32 1, %s2979_s15  }
 0x4d1   : > { %s1792_s29 = scalar_lea.sflag [#allocation5], %s1791_s26 }
 0x4d2   : > { %p2853_p3 = pnand %p2856_p2, %p3078_p8 }
 0x4d4   : > { %2974 = dma.done.wait (!%p2853_p3), %s1792_s29, 128  }
 0x4d5   : > { %2976 = vsyncadd (!%p2853_p3), %s1792_s29, 4294967168  ;;  %s17_s20 = sadd.s32 1, %s2999_s20   ;;  %s3913_s15 = smov %s2983_s16 }
 0x4d6   : > { %p14_p5 = scmp.ge.s32.totalorder %s17_s20, 4   ;;  %s3914_s16 = smov %s2987_s17 }
 0x4d7   : > { %s3915_s17 = smov %s3084_s28  ;;  %s3916_s18 = smov %s2995_s19 }
 0x4d8   : > { %s3917_s19 = smov %s3919_s23  ;;  %16 = sbr.rel (!%p14_p5) target bundleno = 4 (0x4), region = 79 }
 0x4df   :  { %1797 = vsyncpa [#allocation5], 1 }
 0x4e0   :  { %1799 = vsyncpa [#allocation5 + $0x1], 1 }

</bundles_post_ra>
